<compile_context>
chip_gen: v7x
topology: tpu7x:2x2x1
jax: 0.10.0
libtpu: 0.0.40
codegen_flags: <defaults>
</compile_context>

<pallas_src>
import jax
import jax.numpy as jnp
from jax.experimental import pallas as pl
from jax.experimental.pallas import tpu as pltpu

LN_EPS = 1e-5  # PyTorch nn.LayerNorm default


def _round_up(x, m):
    return (x + m - 1) // m * m


def _erf_approx(x):
    # Abramowitz & Stegun 7.1.26: |erf(x) - approx| <= 1.5e-7 (fp32-exact here).
    # Built only from exp / mul / div / where, so it lowers on every TPU gen.
    a1, a2, a3, a4, a5 = (0.254829592, -0.284496736, 1.421413741,
                          -1.453152027, 1.061405429)
    p = 0.3275911
    ax = jnp.abs(x)
    t = 1.0 / (1.0 + p * ax)
    poly = ((((a5 * t + a4) * t + a3) * t + a2) * t + a1) * t
    e = 1.0 - poly * jnp.exp(-ax * ax)
    return jnp.where(x >= 0, e, -e)


def _gelu_erf(x):
    # Matches PyTorch nn.GELU() (exact erf form) to ~1e-7.
    return 0.5 * x * (1.0 + _erf_approx(x * 0.7071067811865476))


def _make_ffn_kernel(*, batch, seq_len, ts, apply_mask, gelu_approximate):
    """Grid = (row_tiles, hidden_chunks); hidden axis is a VMEM-accumulated reduction."""

    def kernel(lens_ref,                                    # SMEM (B,) int32 (scalar prefetch)
               x_ref, w1_ref, b1_ref, w2_ref, vecs_ref,     # inputs
               o_ref,                                       # output
               xn_ref, acc_ref):                            # scratch
        # COMPILE FIX: program_id/num_programs must be called at the top level of
        # the body (not inside pl.when closures); the closures capture the values.
        j = pl.program_id(0)          # row-tile index over flattened batch*seq
        k = pl.program_id(1)          # hidden-chunk index (reduction axis)
        nk = pl.num_programs(1)

        @pl.when(k == 0)
        def _init():
            # ----- pre_ffn_norm, computed once per row tile, cached in VMEM -----
            x = x_ref[...].astype(jnp.float32)                      # (ts, E)
            g1 = vecs_ref[1:2, :]
            beta1 = vecs_ref[2:3, :]
            mu = jnp.mean(x, axis=-1, keepdims=True)
            var = jnp.mean((x - mu) * (x - mu), axis=-1, keepdims=True)
            xn = (x - mu) * jax.lax.rsqrt(var + LN_EPS) * g1 + beta1
            xn_ref[...] = xn.astype(xn_ref.dtype)                   # MXU operand dtype
            acc_ref[...] = jnp.zeros_like(acc_ref)

        # ----- Linear(E -> hk chunk) + GELU, low-precision in / f32 accumulate -----
        h = jnp.dot(xn_ref[...], w1_ref[...],
                    preferred_element_type=jnp.float32) + b1_ref[...]   # (ts, hk) f32
        if gelu_approximate:
            h = jax.nn.gelu(h, approximate=True)   # tanh (EUP) - numerics deviation (v5e option)
        else:
            h = _gelu_erf(h)                        # exact-erf GELU (PyTorch default)

        # ----- Linear(hk chunk -> E), accumulate in f32 VMEM scratch -----
        acc_ref[...] += jnp.dot(h.astype(w2_ref.dtype), w2_ref[...],
                                preferred_element_type=jnp.float32)

        @pl.when(k == nk - 1)
        def _finalize():
            x = x_ref[...].astype(jnp.float32)
            b2 = vecs_ref[0:1, :]
            g2 = vecs_ref[3:4, :]
            beta2 = vecs_ref[4:5, :]
            y = acc_ref[...] + b2

            if apply_mask:
                # Length mask from the SMEM scalars (no per-row mask DMA stream).
                # Flattened row r belongs to batch b iff b*seq_len <= r < b*seq_len+len[b].
                row_ids = j * ts + jax.lax.broadcasted_iota(jnp.int32, (ts, 1), 0)

                def _acc_mask(b, m):
                    start = b * seq_len
                    return m | ((row_ids >= start) & (row_ids < start + lens_ref[b]))

                mask = jnp.zeros((ts, 1), jnp.bool_)
                if batch <= 16:
                    for b in range(batch):          # static unroll, static SMEM reads
                        mask = _acc_mask(b, mask)
                else:
                    mask = jax.lax.fori_loop(0, batch, _acc_mask, mask)
                y = jnp.where(mask, y, 0.0)

            # dropout(p=0.0) is identity in eval.
            # TODO(synk): training-mode dropout (p>0) would use pltpu.prng_seed +
            #             pltpu.stateful_bernoulli here.
            r = y + x
            mu2 = jnp.mean(r, axis=-1, keepdims=True)
            var2 = jnp.mean((r - mu2) * (r - mu2), axis=-1, keepdims=True)
            rn = (r - mu2) * jax.lax.rsqrt(var2 + LN_EPS)
            o_ref[...] = (rn * g2 + beta2).astype(o_ref.dtype)

    return kernel


def feed_forward(x, params, input_lengths=None, *,
                 seq_tile=None, hidden_tile=None,
                 weight_dtype=jnp.bfloat16, gelu_approximate=False):
    """x: (batch, seq, embed) float32. Returns same shape.

    weight_dtype=bf16 (default) halves weight DMA/VMEM; pass jnp.float32 for
    bit-faithful weights. gelu_approximate=True uses the tanh GELU (v5e option).
    """
    B, S, E = x.shape
    H = params["w1"].shape[1]

    # ---- generation-aware tile defaults (guarded hardware query) -------------
    try:
        vmem_cap = int(pltpu.get_tpu_info().vmem_capacity_bytes)
    except Exception:
        vmem_cap = 64 << 20                       # conservative: v7x-sized VMEM/TC
    big_vmem = vmem_cap >= (96 << 20)             # v5e / v6e (128 MiB physical)
    ts_target = seq_tile if seq_tile is not None else (1024 if big_vmem else 512)
    hk_target = hidden_tile if hidden_tile is not None else (1024 if big_vmem else 512)
    ts_target = max(16, _round_up(ts_target, 16))      # bf16 sublane tile is 16
    hk_target = max(128, _round_up(hk_target, 128))    # lane-dense hidden chunks

    # ---- flatten (batch, seq) -> rows so weights stream once per row tile ----
    R = B * S
    ts = min(ts_target, _round_up(R, 16))
    hk = min(hk_target, _round_up(H, 128))

    # ---- fit tiles into the VMEM budget (handles large E without OOM) --------
    wbytes = jnp.dtype(weight_dtype).itemsize

    def _footprint(ts_, hk_):
        return (4 * ts_ * E * 4                   # x + out blocks (double-buffered f32)
                + 4 * E * hk_ * wbytes            # w1 + w2 blocks (double-buffered)
                + 2 * hk_ * 4 + 10 * E * 4        # b1 + stacked bias/LN vectors
                + ts_ * E * (wbytes + 4)          # xn + acc scratch
                + ts_ * hk_ * 4)                  # (ts, hk) GELU intermediate

    budget = max(16 << 20, int(0.8 * vmem_cap) - (2 << 20))
    while _footprint(ts, hk) > budget and ts > 256:
        ts = max(256, _round_up(ts // 2, 16))
    while _footprint(ts, hk) > budget and hk > 128:
        hk = max(128, _round_up(hk // 2, 128))

    R_pad = _round_up(R, ts)
    H_pad = _round_up(H, hk)                      # multiple of hk (and of 128)

    # ---- pad inputs / weights (exact: zero padding, padded rows sliced off) --
    x2 = x.reshape(R, E)
    if R_pad != R:
        x2 = jnp.pad(x2, ((0, R_pad - R), (0, 0)))

    w1 = params["w1"].astype(weight_dtype)
    w2 = params["w2"].astype(weight_dtype)
    b1 = params["b1"].reshape(1, -1).astype(jnp.float32)
    if H_pad != H:
        w1 = jnp.pad(w1, ((0, 0), (0, H_pad - H)))
        b1 = jnp.pad(b1, ((0, 0), (0, H_pad - H)))
        w2 = jnp.pad(w2, ((0, H_pad - H), (0, 0)))

    # stacked small vectors: one constant-index DMA stream instead of five
    vecs = jnp.concatenate(
        [params["b2"].reshape(1, -1), params["g1"].reshape(1, -1),
         params["beta1"].reshape(1, -1), params["g2"].reshape(1, -1),
         params["beta2"].reshape(1, -1)], axis=0).astype(jnp.float32)   # (5, E)

    apply_mask = input_lengths is not None
    lens = (input_lengths.astype(jnp.int32) if apply_mask
            else jnp.zeros((B,), jnp.int32))      # unused when apply_mask=False

    grid = (R_pad // ts, H_pad // hk)

    fp = _footprint(ts, hk)
    vmem_limit = min(max(fp + fp // 2 + (2 << 20), 32 << 20),
                     int(0.8 * vmem_cap))         # never request full physical VMEM

    kernel = _make_ffn_kernel(batch=B, seq_len=S, ts=ts,
                              apply_mask=apply_mask,
                              gelu_approximate=gelu_approximate)

    out = pl.pallas_call(
        kernel,
        out_shape=jax.ShapeDtypeStruct((R_pad, E), x.dtype),
        grid_spec=pltpu.PrefetchScalarGridSpec(
            num_scalar_prefetch=1,
            grid=grid,
            in_specs=[
                pl.BlockSpec((ts, E), lambda j, k, _l: (j, 0)),   # x rows
                pl.BlockSpec((E, hk), lambda j, k, _l: (0, k)),   # w1 chunk
                pl.BlockSpec((1, hk), lambda j, k, _l: (0, k)),   # b1 chunk
                pl.BlockSpec((hk, E), lambda j, k, _l: (k, 0)),   # w2 chunk
                pl.BlockSpec((5, E), lambda j, k, _l: (0, 0)),    # stacked vecs
            ],
            out_specs=pl.BlockSpec((ts, E), lambda j, k, _l: (j, 0)),
            scratch_shapes=[pltpu.VMEM((ts, E), weight_dtype),    # cached pre-LN(x)
                            pltpu.VMEM((ts, E), jnp.float32)]),   # f32 accumulator
        compiler_params=pltpu.CompilerParams(
            dimension_semantics=("parallel", "arbitrary"),
            vmem_limit_bytes=int(vmem_limit)),
    )(lens, x2, w1, b1, w2, vecs)

    out = out[:R] if R_pad != R else out
    return out.reshape(B, S, E)


def feed_forward_ref(x, params, input_lengths=None):
    """Pure-JAX f32 reference (mirrors the PyTorch module)."""
    def ln(v, g, b):
        mu = v.mean(-1, keepdims=True)
        var = ((v - mu) ** 2).mean(-1, keepdims=True)
        return (v - mu) * jax.lax.rsqrt(var + LN_EPS) * g.reshape(-1) + b.reshape(-1)

    xn = ln(x, params["g1"], params["beta1"])
    h = jax.nn.gelu(xn @ params["w1"] + params["b1"].reshape(-1), approximate=False)
    y = h @ params["w2"] + params["b2"].reshape(-1)
    if input_lengths is not None:
        mask = (jnp.arange(x.shape[1])[None, :] < input_lengths[:, None]).astype(x.dtype)
        y = y * mask[..., None]
    return ln(y + x, params["g2"], params["beta2"])


def init_params(key, embed_size, ffn_hidden_dim):
    k1, k2, k3, k4 = jax.random.split(key, 4)
    lim1 = 1.0 / (embed_size ** 0.5)
    lim2 = 1.0 / (ffn_hidden_dim ** 0.5)
    return {
        # Linear weights stored as (in, out) so the kernel does x @ W + b,
        # matching PyTorch's x @ W.T with W of shape (out, in).
        "w1": jax.random.uniform(k1, (embed_size, ffn_hidden_dim),
                                 jnp.float32, -lim1, lim1),
        "b1": jax.random.uniform(k2, (1, ffn_hidden_dim),
                                 jnp.float32, -lim1, lim1),
        "w2": jax.random.uniform(k3, (ffn_hidden_dim, embed_size),
                                 jnp.float32, -lim2, lim2),
        "b2": jax.random.uniform(k4, (1, embed_size),
                                 jnp.float32, -lim2, lim2),
        "g1": jnp.ones((1, embed_size), jnp.float32),
        "beta1": jnp.zeros((1, embed_size), jnp.float32),
        "g2": jnp.ones((1, embed_size), jnp.float32),
        "beta2": jnp.zeros((1, embed_size), jnp.float32),
    }


if __name__ == "__main__":
    batch, seq, embed, hidden = 2, 8, 32, 64
    key = jax.random.PRNGKey(0)
    kx, kp = jax.random.split(key)

    x = jax.random.normal(kx, (batch, seq, embed), jnp.float32)
    input_lengths = jnp.array([8, 5], jnp.int32)
    params = init_params(kp, embed, hidden)

    out = feed_forward(x, params, input_lengths)
    jax.block_until_ready(out)
    assert out.shape == (batch, seq, embed)

    ref = feed_forward_ref(x, params, input_lengths)
    max_err = float(jnp.max(jnp.abs(out - ref)))
    assert max_err < 5e-2, f"mismatch vs reference: {max_err}"

    # also exercise the no-mask path
    out2 = feed_forward(x, params, None)
    jax.block_until_ready(out2)
    ref2 = feed_forward_ref(x, params, None)
    max_err2 = float(jnp.max(jnp.abs(out2 - ref2)))
    assert max_err2 < 5e-2, f"mismatch vs reference (no mask): {max_err2}"

    print("KERNEL_OK")
</pallas_src>

<mosaic_0001>
module attributes {stable_mosaic.version = 11 : i64} {
  func.func @kernel(%arg0: i32, %arg1: i32, %arg2: memref<2xi32, #tpu.memory_space<smem>>, %arg3: memref<16x32xf32, #tpu.memory_space<vmem>>, %arg4: memref<32x128xbf16, #tpu.memory_space<vmem>>, %arg5: memref<1x128xf32, #tpu.memory_space<vmem>>, %arg6: memref<128x32xbf16, #tpu.memory_space<vmem>>, %arg7: memref<5x32xf32, #tpu.memory_space<vmem>>, %arg8: memref<16x32xf32, #tpu.memory_space<vmem>>, %arg9: memref<16x32xbf16, #tpu.memory_space<vmem>>, %arg10: memref<16x32xf32, #tpu.memory_space<vmem>>) attributes {dimension_semantics = [#tpu.dimension_semantics<parallel>, #tpu.dimension_semantics<arbitrary>], iteration_bounds = array<i64: 1, 1>, scalar_prefetch = 1 : i64, scratch_operands = 2 : i64, tpu.core_type = #tpu.core_type<tc>, window_params = [{transform_indices = @transform_0, window_bounds = array<i64: 16, 32>}, {transform_indices = @transform_1, window_bounds = array<i64: 32, 128>}, {transform_indices = @transform_2, window_bounds = array<i64: 1, 128>}, {transform_indices = @transform_3, window_bounds = array<i64: 128, 32>}, {pipeline_mode = #tpu.pipeline_mode<synchronous>, transform_indices = @transform_4, window_bounds = array<i64: 5, 32>}, {transform_indices = @transform_5, window_bounds = array<i64: 16, 32>}]} {
    %c0_i32 = arith.constant 0 : i32
    %0 = arith.cmpi eq, %arg1, %c0_i32 : i32
    %1 = arith.extui %0 : i1 to i32
    %c0_i32_0 = arith.constant 0 : i32
    %2 = arith.cmpi ne, %1, %c0_i32_0 : i32
    scf.if %2 {
      %c0_30 = arith.constant 0 : index
      %c0_31 = arith.constant 0 : index
      %58 = vector.load %arg3[%c0_30, %c0_31] : memref<16x32xf32, #tpu.memory_space<vmem>>, vector<16x32xf32>
      %c1 = arith.constant 1 : index
      %c0_32 = arith.constant 0 : index
      %59 = vector.load %arg7[%c1, %c0_32] : memref<5x32xf32, #tpu.memory_space<vmem>>, vector<1x32xf32>
      %c2 = arith.constant 2 : index
      %c0_33 = arith.constant 0 : index
      %60 = vector.load %arg7[%c2, %c0_33] : memref<5x32xf32, #tpu.memory_space<vmem>>, vector<1x32xf32>
      %cst_34 = arith.constant dense<0.000000e+00> : vector<16xf32>
      %61 = vector.multi_reduction <add>, %58, %cst_34 [1] : vector<16x32xf32> to vector<16xf32>
      %62 = vector.shape_cast %61 : vector<16xf32> to vector<16x1xf32>
      %cst_35 = arith.constant 3.200000e+01 : f32
      %63 = vector.broadcast %cst_35 : f32 to vector<16x1xf32>
      %64 = arith.divf %62, %63 : vector<16x1xf32>
      %65 = vector.broadcast %64 : vector<16x1xf32> to vector<16x32xf32>
      %66 = arith.subf %58, %65 : vector<16x32xf32>
      %67 = vector.broadcast %64 : vector<16x1xf32> to vector<16x32xf32>
      %68 = arith.subf %58, %67 : vector<16x32xf32>
      %69 = arith.mulf %66, %68 : vector<16x32xf32>
      %cst_36 = arith.constant dense<0.000000e+00> : vector<16xf32>
      %70 = vector.multi_reduction <add>, %69, %cst_36 [1] : vector<16x32xf32> to vector<16xf32>
      %71 = vector.shape_cast %70 : vector<16xf32> to vector<16x1xf32>
      %cst_37 = arith.constant 3.200000e+01 : f32
      %72 = vector.broadcast %cst_37 : f32 to vector<16x1xf32>
      %73 = arith.divf %71, %72 : vector<16x1xf32>
      %74 = vector.broadcast %64 : vector<16x1xf32> to vector<16x32xf32>
      %75 = arith.subf %58, %74 : vector<16x32xf32>
      %cst_38 = arith.constant 9.99999974E-6 : f32
      %76 = vector.broadcast %cst_38 : f32 to vector<16x1xf32>
      %77 = arith.addf %73, %76 : vector<16x1xf32>
      %78 = math.rsqrt %77 : vector<16x1xf32>
      %79 = vector.broadcast %78 : vector<16x1xf32> to vector<16x32xf32>
      %80 = arith.mulf %75, %79 : vector<16x32xf32>
      %81 = vector.broadcast %59 : vector<1x32xf32> to vector<16x32xf32>
      %82 = arith.mulf %80, %81 : vector<16x32xf32>
      %83 = vector.broadcast %60 : vector<1x32xf32> to vector<16x32xf32>
      %84 = arith.addf %82, %83 : vector<16x32xf32>
      %85 = arith.truncf %84 : vector<16x32xf32> to vector<16x32xbf16>
      %c0_39 = arith.constant 0 : index
      %c0_40 = arith.constant 0 : index
      %86 = vector.load %arg9[%c0_39, %c0_40] : memref<16x32xbf16, #tpu.memory_space<vmem>>, vector<16x32xbf16>
      tpu.vector_store %arg9[%c0_39, %c0_40], %85 {strides = array<i32>} : memref<16x32xbf16, #tpu.memory_space<vmem>>, vector<16x32xbf16>,
      %cst_41 = arith.constant 0.000000e+00 : f32
      %87 = vector.broadcast %cst_41 : f32 to vector<16x32xf32>
      %c0_42 = arith.constant 0 : index
      %c0_43 = arith.constant 0 : index
      %88 = vector.load %arg10[%c0_42, %c0_43] : memref<16x32xf32, #tpu.memory_space<vmem>>, vector<16x32xf32>
      tpu.vector_store %arg10[%c0_42, %c0_43], %87 {strides = array<i32>} : memref<16x32xf32, #tpu.memory_space<vmem>>, vector<16x32xf32>,
    } else {
    }
    %c0 = arith.constant 0 : index
    %c0_1 = arith.constant 0 : index
    %3 = vector.load %arg9[%c0, %c0_1] : memref<16x32xbf16, #tpu.memory_space<vmem>>, vector<16x32xbf16>
    %c0_2 = arith.constant 0 : index
    %c0_3 = arith.constant 0 : index
    %4 = vector.load %arg4[%c0_2, %c0_3] : memref<32x128xbf16, #tpu.memory_space<vmem>>, vector<32x128xbf16>
    %cst = arith.constant dense<0.000000e+00> : vector<16x128xf32>
    %5 = tpu.matmul %3, %4, %cst {dimension_numbers = #tpu.dot_dimension_numbers<[1], [0], [0], [1], [0, 0, 1, 1], [], []>} : vector<16x32xbf16>, vector<32x128xbf16>, vector<16x128xf32> -> vector<16x128xf32>
    %c0_4 = arith.constant 0 : index
    %c0_5 = arith.constant 0 : index
    %6 = vector.load %arg5[%c0_4, %c0_5] : memref<1x128xf32, #tpu.memory_space<vmem>>, vector<1x128xf32>
    %7 = vector.broadcast %6 : vector<1x128xf32> to vector<16x128xf32>
    %8 = arith.addf %5, %7 : vector<16x128xf32>
    %cst_6 = arith.constant 5.000000e-01 : f32
    %9 = vector.broadcast %cst_6 : f32 to vector<16x128xf32>
    %10 = arith.mulf %9, %8 : vector<16x128xf32>
    %cst_7 = arith.constant 0.707106769 : f32
    %11 = vector.broadcast %cst_7 : f32 to vector<16x128xf32>
    %12 = arith.mulf %8, %11 : vector<16x128xf32>
    %13 = math.absf %12 : vector<16x128xf32>
    %cst_8 = arith.constant 0.327591091 : f32
    %14 = vector.broadcast %cst_8 : f32 to vector<16x128xf32>
    %15 = arith.mulf %14, %13 : vector<16x128xf32>
    %cst_9 = arith.constant 1.000000e+00 : f32
    %16 = vector.broadcast %cst_9 : f32 to vector<16x128xf32>
    %17 = arith.addf %16, %15 : vector<16x128xf32>
    %cst_10 = arith.constant 1.000000e+00 : f32
    %18 = vector.broadcast %cst_10 : f32 to vector<16x128xf32>
    %19 = arith.divf %18, %17 : vector<16x128xf32>
    %cst_11 = arith.constant 1.06140542 : f32
    %20 = vector.broadcast %cst_11 : f32 to vector<16x128xf32>
    %21 = arith.mulf %20, %19 : vector<16x128xf32>
    %cst_12 = arith.constant -1.45315206 : f32
    %22 = vector.broadcast %cst_12 : f32 to vector<16x128xf32>
    %23 = arith.addf %21, %22 : vector<16x128xf32>
    %24 = arith.mulf %23, %19 : vector<16x128xf32>
    %cst_13 = arith.constant 1.42141378 : f32
    %25 = vector.broadcast %cst_13 : f32 to vector<16x128xf32>
    %26 = arith.addf %24, %25 : vector<16x128xf32>
    %27 = arith.mulf %26, %19 : vector<16x128xf32>
    %cst_14 = arith.constant -0.284496725 : f32
    %28 = vector.broadcast %cst_14 : f32 to vector<16x128xf32>
    %29 = arith.addf %27, %28 : vector<16x128xf32>
    %30 = arith.mulf %29, %19 : vector<16x128xf32>
    %cst_15 = arith.constant 0.254829586 : f32
    %31 = vector.broadcast %cst_15 : f32 to vector<16x128xf32>
    %32 = arith.addf %30, %31 : vector<16x128xf32>
    %33 = arith.mulf %32, %19 : vector<16x128xf32>
    %cst_16 = arith.constant 0.000000e+00 : f32
    %34 = vector.broadcast %cst_16 : f32 to vector<16x128xf32>
    %35 = arith.subf %34, %13 : vector<16x128xf32>
    %36 = arith.mulf %35, %13 : vector<16x128xf32>
    %37 = math.exp %36 : vector<16x128xf32>
    %38 = arith.mulf %33, %37 : vector<16x128xf32>
    %cst_17 = arith.constant 1.000000e+00 : f32
    %39 = vector.broadcast %cst_17 : f32 to vector<16x128xf32>
    %40 = arith.subf %39, %38 : vector<16x128xf32>
    %cst_18 = arith.constant 0.000000e+00 : f32
    %41 = vector.broadcast %cst_18 : f32 to vector<16x128xf32>
    %42 = arith.cmpf oge, %12, %41 : vector<16x128xf32>
    %cst_19 = arith.constant 0.000000e+00 : f32
    %43 = vector.broadcast %cst_19 : f32 to vector<16x128xf32>
    %44 = arith.subf %43, %40 : vector<16x128xf32>
    %45 = arith.select %42, %40, %44 : vector<16x128xi1>, vector<16x128xf32>
    %cst_20 = arith.constant 1.000000e+00 : f32
    %46 = vector.broadcast %cst_20 : f32 to vector<16x128xf32>
    %47 = arith.addf %46, %45 : vector<16x128xf32>
    %48 = arith.mulf %10, %47 : vector<16x128xf32>
    %c0_21 = arith.constant 0 : index
    %c0_22 = arith.constant 0 : index
    %49 = vector.load %arg10[%c0_21, %c0_22] : memref<16x32xf32, #tpu.memory_space<vmem>>, vector<16x32xf32>
    %50 = arith.truncf %48 : vector<16x128xf32> to vector<16x128xbf16>
    %c0_23 = arith.constant 0 : index
    %c0_24 = arith.constant 0 : index
    %51 = vector.load %arg6[%c0_23, %c0_24] : memref<128x32xbf16, #tpu.memory_space<vmem>>, vector<128x32xbf16>
    %cst_25 = arith.constant dense<0.000000e+00> : vector<16x32xf32>
    %52 = tpu.matmul %50, %51, %cst_25 {dimension_numbers = #tpu.dot_dimension_numbers<[1], [0], [0], [1], [0, 0, 1, 1], [], []>} : vector<16x128xbf16>, vector<128x32xbf16>, vector<16x32xf32> -> vector<16x32xf32>
    %53 = arith.addf %49, %52 : vector<16x32xf32>
    %c0_26 = arith.constant 0 : index
    %c0_27 = arith.constant 0 : index
    %54 = vector.load %arg10[%c0_26, %c0_27] : memref<16x32xf32, #tpu.memory_space<vmem>>, vector<16x32xf32>
    tpu.vector_store %arg10[%c0_26, %c0_27], %53 {strides = array<i32>} : memref<16x32xf32, #tpu.memory_space<vmem>>, vector<16x32xf32>,
    %c0_i32_28 = arith.constant 0 : i32
    %55 = arith.cmpi eq, %arg1, %c0_i32_28 : i32
    %56 = arith.extui %55 : i1 to i32
    %c0_i32_29 = arith.constant 0 : i32
    %57 = arith.cmpi ne, %56, %c0_i32_29 : i32
    scf.if %57 {
      %c0_30 = arith.constant 0 : index
      %c0_31 = arith.constant 0 : index
      %58 = vector.load %arg3[%c0_30, %c0_31] : memref<16x32xf32, #tpu.memory_space<vmem>>, vector<16x32xf32>
      %c0_32 = arith.constant 0 : index
      %c0_33 = arith.constant 0 : index
      %59 = vector.load %arg7[%c0_32, %c0_33] : memref<5x32xf32, #tpu.memory_space<vmem>>, vector<1x32xf32>
      %c3 = arith.constant 3 : index
      %c0_34 = arith.constant 0 : index
      %60 = vector.load %arg7[%c3, %c0_34] : memref<5x32xf32, #tpu.memory_space<vmem>>, vector<1x32xf32>
      %c4 = arith.constant 4 : index
      %c0_35 = arith.constant 0 : index
      %61 = vector.load %arg7[%c4, %c0_35] : memref<5x32xf32, #tpu.memory_space<vmem>>, vector<1x32xf32>
      %c0_36 = arith.constant 0 : index
      %c0_37 = arith.constant 0 : index
      %62 = vector.load %arg10[%c0_36, %c0_37] : memref<16x32xf32, #tpu.memory_space<vmem>>, vector<16x32xf32>
      %63 = vector.broadcast %59 : vector<1x32xf32> to vector<16x32xf32>
      %64 = arith.addf %62, %63 : vector<16x32xf32>
      %c16_i32 = arith.constant 16 : i32
      %65 = arith.muli %arg0, %c16_i32 : i32
      %66 = tpu.iota {dimensions = array<i32: 0>} : vector<16x1xi32>
      %67 = vector.broadcast %65 : i32 to vector<16x1xi32>
      %68 = arith.addi %67, %66 : vector<16x1xi32>
      %false = arith.constant false
      %69 = vector.broadcast %false : i1 to vector<16x1xi1>
      %c0_i32_38 = arith.constant 0 : i32
      %70 = vector.broadcast %c0_i32_38 : i32 to vector<16x1xi32>
      %71 = arith.cmpi sge, %68, %70 : vector<16x1xi32>
      %c0_39 = arith.constant 0 : index
      %72 = memref.load %arg2[%c0_39] : memref<2xi32, #tpu.memory_space<smem>>
      %c0_i32_40 = arith.constant 0 : i32
      %73 = arith.addi %c0_i32_40, %72 : i32
      %74 = vector.broadcast %73 : i32 to vector<16x1xi32>
      %75 = arith.cmpi slt, %68, %74 : vector<16x1xi32>
      %76 = arith.andi %71, %75 : vector<16x1xi1>
      %77 = arith.ori %69, %76 : vector<16x1xi1>
      %c8_i32 = arith.constant 8 : i32
      %78 = vector.broadcast %c8_i32 : i32 to vector<16x1xi32>
      %79 = arith.cmpi sge, %68, %78 : vector<16x1xi32>
      %c1 = arith.constant 1 : index
      %80 = memref.load %arg2[%c1] : memref<2xi32, #tpu.memory_space<smem>>
      %c8_i32_41 = arith.constant 8 : i32
      %81 = arith.addi %c8_i32_41, %80 : i32
      %82 = vector.broadcast %81 : i32 to vector<16x1xi32>
      %83 = arith.cmpi slt, %68, %82 : vector<16x1xi32>
      %84 = arith.andi %79, %83 : vector<16x1xi1>
      %85 = arith.ori %77, %84 : vector<16x1xi1>
      %cst_42 = arith.constant 0.000000e+00 : f32
      %86 = vector.shape_cast %85 : vector<16x1xi1> to vector<16x1xi1>
      %87 = vector.broadcast %86 : vector<16x1xi1> to vector<16x32xi1>
      %88 = vector.broadcast %cst_42 : f32 to vector<16x32xf32>
      %89 = arith.select %87, %64, %88 : vector<16x32xi1>, vector<16x32xf32>
      %90 = arith.addf %89, %58 : vector<16x32xf32>
      %cst_43 = arith.constant dense<0.000000e+00> : vector<16xf32>
      %91 = vector.multi_reduction <add>, %90, %cst_43 [1] : vector<16x32xf32> to vector<16xf32>
      %92 = vector.shape_cast %91 : vector<16xf32> to vector<16x1xf32>
      %cst_44 = arith.constant 3.200000e+01 : f32
      %93 = vector.broadcast %cst_44 : f32 to vector<16x1xf32>
      %94 = arith.divf %92, %93 : vector<16x1xf32>
      %95 = vector.broadcast %94 : vector<16x1xf32> to vector<16x32xf32>
      %96 = arith.subf %90, %95 : vector<16x32xf32>
      %97 = vector.broadcast %94 : vector<16x1xf32> to vector<16x32xf32>
      %98 = arith.subf %90, %97 : vector<16x32xf32>
      %99 = arith.mulf %96, %98 : vector<16x32xf32>
      %cst_45 = arith.constant dense<0.000000e+00> : vector<16xf32>
      %100 = vector.multi_reduction <add>, %99, %cst_45 [1] : vector<16x32xf32> to vector<16xf32>
      %101 = vector.shape_cast %100 : vector<16xf32> to vector<16x1xf32>
      %cst_46 = arith.constant 3.200000e+01 : f32
      %102 = vector.broadcast %cst_46 : f32 to vector<16x1xf32>
      %103 = arith.divf %101, %102 : vector<16x1xf32>
      %104 = vector.broadcast %94 : vector<16x1xf32> to vector<16x32xf32>
      %105 = arith.subf %90, %104 : vector<16x32xf32>
      %cst_47 = arith.constant 9.99999974E-6 : f32
      %106 = vector.broadcast %cst_47 : f32 to vector<16x1xf32>
      %107 = arith.addf %103, %106 : vector<16x1xf32>
      %108 = math.rsqrt %107 : vector<16x1xf32>
      %109 = vector.broadcast %108 : vector<16x1xf32> to vector<16x32xf32>
      %110 = arith.mulf %105, %109 : vector<16x32xf32>
      %111 = vector.broadcast %60 : vector<1x32xf32> to vector<16x32xf32>
      %112 = arith.mulf %110, %111 : vector<16x32xf32>
      %113 = vector.broadcast %61 : vector<1x32xf32> to vector<16x32xf32>
      %114 = arith.addf %112, %113 : vector<16x32xf32>
      %c0_48 = arith.constant 0 : index
      %c0_49 = arith.constant 0 : index
      %115 = vector.load %arg8[%c0_48, %c0_49] : memref<16x32xf32, #tpu.memory_space<vmem>>, vector<16x32xf32>
      tpu.vector_store %arg8[%c0_48, %c0_49], %114 {strides = array<i32>} : memref<16x32xf32, #tpu.memory_space<vmem>>, vector<16x32xf32>,
    } else {
    }
    return
  }
  func.func @transform_0(%arg0: i32, %arg1: i32, %arg2: memref<2xi32, #tpu.memory_space<smem>>) -> (i32, i32) {
    %c0_i32 = arith.constant 0 : i32
    %c0_i32_0 = arith.constant 0 : i32
    return %arg0, %c0_i32 : i32, i32
  }
  func.func @transform_1(%arg0: i32, %arg1: i32, %arg2: memref<2xi32, #tpu.memory_space<smem>>) -> (i32, i32) {
    %c0_i32 = arith.constant 0 : i32
    %c0_i32_0 = arith.constant 0 : i32
    return %c0_i32, %arg1 : i32, i32
  }
  func.func @transform_2(%arg0: i32, %arg1: i32, %arg2: memref<2xi32, #tpu.memory_space<smem>>) -> (i32, i32) {
    %c0_i32 = arith.constant 0 : i32
    %c0_i32_0 = arith.constant 0 : i32
    return %c0_i32, %arg1 : i32, i32
  }
  func.func @transform_3(%arg0: i32, %arg1: i32, %arg2: memref<2xi32, #tpu.memory_space<smem>>) -> (i32, i32) {
    %c0_i32 = arith.constant 0 : i32
    %c0_i32_0 = arith.constant 0 : i32
    return %arg1, %c0_i32 : i32, i32
  }
  func.func @transform_4(%arg0: i32, %arg1: i32, %arg2: memref<2xi32, #tpu.memory_space<smem>>) -> (i32, i32) {
    %c0_i32 = arith.constant 0 : i32
    %c0_i32_0 = arith.constant 0 : i32
    %c0_i32_1 = arith.constant 0 : i32
    return %c0_i32, %c0_i32_0 : i32, i32
  }
  func.func @transform_5(%arg0: i32, %arg1: i32, %arg2: memref<2xi32, #tpu.memory_space<smem>>) -> (i32, i32) {
    %c0_i32 = arith.constant 0 : i32
    %c0_i32_0 = arith.constant 0 : i32
    return %arg0, %c0_i32 : i32, i32
  }
}

</mosaic_0001>

<bundles_post_ra>
// kernel: tpu_custom_call.1
= control target key start
LH: loop header
LB: loop body
LE: loop exit
PB: predicated region body
PF: predicated region fallthrough
CT: control target
= control target key end

     0   :  { %s687_s0 = inlined_call_operand.vmem [shape: s32[2], index: 0, kind: input, shape index: {}]   ;;  %s688_s1 = inlined_call_operand.vmem [shape: f32[16,32], index: 1, kind: input, shape index: {}]   ;;  %s689_s2 = inlined_call_operand.vmem [shape: bf16[32,128], index: 2, kind: input, shape index: {}]   ;;  %s690_s3 = inlined_call_operand.vmem [shape: f32[1,128], index: 3, kind: input, shape index: {}]   ;;  %s691_s4 = inlined_call_operand.vmem [shape: bf16[128,32], index: 4, kind: input, shape index: {}]   ;;  %s692_s5 = inlined_call_operand.vmem [shape: f32[5,32], index: 5, kind: input, shape index: {}]   ;;  %s693_s6 = inlined_call_operand.hbm [shape: f32[16,32], index: 6, kind: output, shape index: {}]  }
   0x1   :  { %s11_s23 = sshll.u32 %s687_s0, 4  ;;  %s12_s23 = int_to_ptr.vmem [resolvable:$true] %s11_s23 }
   0x2   :  { %s513_s24 = scalar_lea.vmem %s12_s23, 16  ;;  %p518_p1 = scmp.lt.s32.totalorder %s12_s23, %s12_s23 }
   0x3   :  { %p514_p0 = scmp.ne.s32.totalorder %s12_s23, %s513_s24  ;;  %p519_p2 = scmp.lt.s32.totalorder %s513_s24, %s513_s24 }
   0x5   :  { %p520_p3 = por %p519_p2, %p518_p1 }
   0x7   :  { %p521_p4 = pnand %p520_p3, %p514_p0 }
   0x9   :  { %524 = shalt.err (!%p521_p4)  }
   0xa   :  { %s551_s25 = smov [#allocation5]  }
   0xb   :  { %14 = dma.vmem_to_smem %s12_s23, 16, %s551_s25, [#allocation4] }
   0xc   :  { %547 = dma.done.wait [#allocation4], 16 }
   0xd   :  { %548 = vsyncadd [#allocation4], 4294967280 }
   0xe   :  { %16 = sfence }
   0xf   :  { %v598_v0 = vld [vmem:[%s688_s1] sm:$0xff]  ;;  %vm37_vm0 = vcmask 261120   ;;  %v603_v1 = vld [vmem:[%s688_s1 + $0x8] sm:$0xff] }
  0x10   :  { %v38_v2 = vsel %vm37_vm0, %v598_v0, 0.0  ;;  %v41_v3 = vsel %vm37_vm0, %v603_v1, 0.0 }
  0x11   :  { %39 = vadd.xlane.f32.xlu0 %v38_v2 }
  0x15   :  { %42 = vadd.xlane.f32.xlu0 %v41_v3 }
  0x16   :  { %17 = vsyncpa [#allocation7], 0  ;;  %v487_v14 = vld [vmem:[%s689_s2] sm:$0xff]   ;;  %v552_v15 = vmov 0.0   ;;  %v488_v16 = vld [vmem:[%s689_s2 + $0x8] sm:$0xff]   ;;  %vm553_vm1 = vmmov 0  }
  0x17   :  { %453 = vmatprep.subr.bf16.mxu0 %v552_v15  ;;  %79 = vst.msk [vmem:[#allocation3] sm:$0xff] %vm37_vm0, %v552_v15  ;;  %80 = vst.msk [vmem:[#allocation3 + $0x8] sm:$0xff] %vm37_vm0, %v552_v15  ;;  %461 = vmatprep.subr.bf16.mxu1 %v552_v15  ;;  %v423_v25 = vld [vmem:[%s692_s5 + $0x1] ss:$0 sm:$0xff]  ;;  %v424_v29 = vld [vmem:[%s692_s5 + $0x2] ss:$0 sm:$0xff] }
  0x18   :  { %454 = vmatpush3.bf16.msra.mxu0 %v487_v14  ;;  %457 = vmatprep.mubr.msk.bf16.mxu0 %vm553_vm1, %v552_v15  ;;  %v489_v35 = vld [vmem:[%s691_s4] sm:$0xff]   ;;  %v490_v36 = vld [vmem:[%s691_s4 + $0x8] sm:$0xff]   ;;  %v491_v37 = vld [vmem:[%s691_s4 + $0x10] sm:$0xff]   ;;  %s554_s2 = smov [#allocation6]  }
  0x19   :  { %455 = vmatprep.subr.bf16.mxu0 %v552_v15  ;;  %477 = vmatprep.mubr.msk.bf16.mxu1 %vm553_vm1, %v552_v15  ;;  %v492_v38 = vld [vmem:[%s691_s4 + $0x18] sm:$0xff]   ;;  %v493_v39 = vld [vmem:[%s691_s4 + $0x20] sm:$0xff]   ;;  %v494_v40 = vld [vmem:[%s691_s4 + $0x28] sm:$0xff]   ;;  %s412_s10 = sshll.u32 %s554_s2, 4  ;;  %s413_s10 = int_to_ptr.vmem [resolvable:$true] %s412_s10 }
  0x1a   :  { %462 = vmatpush3.bf16.msra.mxu1 %v489_v35  ;;  %v495_v41 = vld [vmem:[%s691_s4 + $0x30] sm:$0xff]   ;;  %v496_v42 = vld [vmem:[%s691_s4 + $0x38] sm:$0xff]   ;;  %v425_v43 = vld [vmem:[%s690_s3] ss:$0 sm:$0xff]  ;;  %s438_s3 = sld [smem:[#allocation5 + $0x1]]  ;;  %s341_s4 = sld [smem:[#allocation5]] }
  0x1b   :  { %463 = vmatprep.subr.bf16.mxu1 %v552_v15  ;;  %s525_s11 = scalar_lea.vmem %s413_s10, 256  ;;  %p530_p6 = scmp.lt.s32.totalorder %s413_s10, %s413_s10 }
  0x1c   :  { %456 = vmatpush3.bf16.msra.mxu0 %v488_v16  ;;  %p526_p5 = scmp.ne.s32.totalorder %s413_s10, %s525_s11  ;;  %p531_p7 = scmp.lt.s32.totalorder %s525_s11, %s525_s11 }
  0x1e   :  { %464 = vmatpush3.bf16.msra.mxu1 %v490_v36  ;;  %p532_p8 = por %p531_p7, %p530_p6 }
  0x1f   :  { %465 = vmatprep.subr.bf16.mxu1 %v552_v15 }
  0x20   :  { %s350_s28 = sadd.s32 8, %s438_s3  ;;  %p533_p9 = pnand %p532_p8, %p526_p5 }
  0x22   :  { %466 = vmatpush3.bf16.msra.mxu1 %v491_v37 }
  0x23   :  { %467 = vmatprep.subr.bf16.mxu1 %v552_v15 }
  0x26   :  { %468 = vmatpush3.bf16.msra.mxu1 %v492_v38 }
  0x27   :  { %469 = vmatprep.subr.bf16.mxu1 %v552_v15 }
  0x2a   :  { %470 = vmatpush3.bf16.msra.mxu1 %v493_v39  ;;  %v333_v39 = vlaneseq }
  0x2b   :  { %471 = vmatprep.subr.bf16.mxu1 %v552_v15 }
  0x2e   :  { %472 = vmatpush3.bf16.msra.mxu1 %v494_v40  ;;  %v204_v40 = vld [vmem:[#allocation3] sm:$0xff] }
  0x2f   :  { %473 = vmatprep.subr.bf16.mxu1 %v552_v15 }
  0x32   :  { %474 = vmatpush3.bf16.msra.mxu1 %v495_v41 }
  0x33   :  { %475 = vmatprep.subr.bf16.mxu1 %v552_v15 }
  0x36   :  { %476 = vmatpush3.bf16.msra.mxu1 %v496_v42  ;;  %v205_v42 = vld [vmem:[#allocation3 + $0x8] sm:$0xff] }
  0x9e   :  { %v40_v4 = vpop.xlane.xlu0 %39 }
  0x9f   :  { %v45_v5 = vmul.f32 0.03125, %v40_v4 }
  0xa1   :  { %v47_v6 = vsub.f32 %v598_v0, %v45_v5 }
  0xa2   :  { %v43_v7 = vpop.xlane.xlu0 %42 }
  0xa3   :  { %v46_v8 = vmul.f32 0.03125, %v43_v7  ;;  %v49_v9 = vmul.f32 %v47_v6, %v47_v6 }
  0xa5   :  { %v48_v10 = vsub.f32 %v603_v1, %v46_v8  ;;  %v51_v11 = vsel %vm37_vm0, %v49_v9, 0.0 }
  0xa6   :  { %52 = vadd.xlane.f32.xlu1 %v51_v11 }
  0xa7   :  { %v50_v12 = vmul.f32 %v48_v10, %v48_v10 }
  0xa9   :  { %v54_v13 = vsel %vm37_vm0, %v50_v12, 0.0 }
  0xaa   :  { %55 = vadd.xlane.f32.xlu1 %v54_v13 }
 0x133   :  { %v53_v17 = vpop.xlane.xlu1 %52 }
 0x134   :  { %v57_v18 = vmul.f32 0.03125, %v53_v17 }
 0x136   :  { %v59_v19 = vadd.f32 1e-05, %v57_v18 }
 0x137   :  { %v56_v20 = vpop.xlane.xlu1 %55 }
 0x138   :  { %497 = vrsqrt.f32 %v59_v19  ;;  %v58_v21 = vmul.f32 0.03125, %v56_v20 }
 0x13a   :  { %v60_v22 = vadd.f32 1e-05, %v58_v21 }
 0x13c   :  { %499 = vrsqrt.f32 %v60_v22 }
 0x142   :  { %v498_v23 = vpop.eup %497 }
 0x143   :  { %v63_v24 = vmul.f32 %v498_v23, %v47_v6 }
 0x145   :  { %v69_v27 = vmul.f32 %v423_v25, %v63_v24 }
 0x146   :  { %v500_v26 = vpop.eup %499 }
 0x147   :  { %v64_v28 = vmul.f32 %v500_v26, %v48_v10  ;;  %v75_v31 = vadd.f32 %v424_v29, %v69_v27 }
 0x149   :  { %v70_v30 = vmul.f32 %v423_v25, %v64_v28 }
 0x14b   :  { %v76_v32 = vadd.f32 %v424_v29, %v70_v30 }
 0x14d   :  { %v77_v33 = vpack.c.bf16 %v76_v32, %v75_v31 }
 0x14f   :  { %78 = vst.msk [vmem:[#allocation2] sm:$0xff] %vm37_vm0, %v77_v33 }
 0x156   :  { %v81_v34 = vld [vmem:[#allocation2] sm:$0xff] }
 0x157   :  { %458 = vmatmul.mubr.msk.bf16.vlgmr.msra.gmra.mrb[0].mxu0 %vm37_vm0, %v81_v34 }
 0x22a   :  { %v143_v44 = vpop.f32.mrb[0].mxu0 }
 0x22b   :  { %v144_v45 = vadd.f32 %v425_v43, %v143_v44  ;;  %v459_v46 = vpop.f32.mrb[1].mxu0 }
 0x22c   :  { %v146_v47 = vpop.f32.mrb[2].mxu0  ;;  %v334_v46 = vshrl.u32 %v333_v39, 7 }
 0x22d   :  { %v152_v48 = vmul.f32 0.70710677, %v144_v45  ;;  %v147_v49 = vadd.f32 %v425_v43, %v146_v47  ;;  %v460_v50 = vpop.f32.mrb[3].mxu0  ;;  %v150_v33 = vmul.f32 0.5, %v144_v45 }
 0x22e   :  { %v342_v50 = vstv %s341_s4 }
 0x22f   :  { %v154_v51 = vand.u32 2147483647, %v152_v48  ;;  %v153_v52 = vmul.f32 0.70710677, %v147_v49  ;;  %vm194_vm2 = vcmp.ge.f32.partialorder %v152_v48, 0.0  ;;  %v151_v34 = vmul.f32 0.5, %v147_v49 }
 0x230   :  { %v335_v49 = vadd.s32 8, %v334_v46  ;;  %vm343_vm6 = vcmp.lt.s32.totalorder %v334_v46, %v342_v50 }
 0x231   :  { %v156_v53 = vmul.f32 0.3275911, %v154_v51  ;;  %v155_v54 = vand.u32 2147483647, %v153_v52  ;;  %v182_v58 = vsub.f32 0.0, %v154_v51  ;;  %vm195_vm3 = vcmp.ge.f32.partialorder %v153_v52, 0.0 }
 0x232   :  { %v437_v52 = vld [vmem:[%s692_s5] ss:$0 sm:$0xff]  ;;  %vm344_vm4 = vcmp.lt.s32.totalorder %v335_v49, %v342_v50 }
 0x233   :  { %v158_v55 = vadd.f32 1.0, %v156_v53  ;;  %v157_v56 = vmul.f32 0.3275911, %v155_v54  ;;  %v183_v59 = vsub.f32 0.0, %v155_v54  ;;  %v184_v61 = vmul.f32 %v182_v58, %v154_v51 }
 0x234   :  { %v351_v51 = vstv %s350_s28 }
 0x235   :  { %501 = vrcp.f32 %v158_v55  ;;  %v159_v57 = vadd.f32 1.0, %v157_v56  ;;  %v185_v3 = vmul.f32 %v183_v59, %v155_v54  ;;  %v186_v4 = vmul.f32 1.442695, %v184_v61 }
 0x236   :  { %vm353_vm5 = vcmp.lt.s32.totalorder %v335_v49, %v351_v51 }
 0x237   :  { %503 = vrcp.f32 %v159_v57  ;;  %v188_v9 = vmul.f32 1.442695, %v185_v3  ;;  %vm357_vm7 = vmor %vm344_vm4, %vm353_vm5 }
 0x238   :  { %505 = vpow2.f32 %v186_v4 }
 0x239   :  { %507 = vpow2.f32 %v188_v9 }
 0x23f   :  { %v502_v60 = vpop.eup %501 }
 0x240   :  { %v164_v62 = vmul.f32 1.0614054, %v502_v60 }
 0x241   :  { %v504_v63 = vpop.eup %503 }
 0x242   :  { %v166_v2 = vadd.f32 -1.4531521, %v164_v62  ;;  %v165_v5 = vmul.f32 1.0614054, %v504_v63  ;;  %v506_v20 = vpop.eup %505 }
 0x243   :  { %v508_v24 = vpop.eup %507 }
 0x244   :  { %v168_v6 = vmul.f32 %v502_v60, %v166_v2  ;;  %v167_v7 = vadd.f32 -1.4531521, %v165_v5 }
 0x246   :  { %v170_v8 = vadd.f32 1.4214138, %v168_v6  ;;  %v169_v10 = vmul.f32 %v504_v63, %v167_v7 }
 0x248   :  { %v172_v11 = vmul.f32 %v502_v60, %v170_v8  ;;  %v171_v12 = vadd.f32 1.4214138, %v169_v10 }
 0x24a   :  { %v174_v13 = vadd.f32 -0.28449672, %v172_v11  ;;  %v173_v14 = vmul.f32 %v504_v63, %v171_v12 }
 0x24c   :  { %v176_v15 = vmul.f32 %v502_v60, %v174_v13  ;;  %v175_v16 = vadd.f32 -0.28449672, %v173_v14 }
 0x24e   :  { %v178_v17 = vadd.f32 0.2548296, %v176_v15  ;;  %v177_v18 = vmul.f32 %v504_v63, %v175_v16  ;;  %v439_v16 = vld [vmem:[%s692_s5 + $0x3] ss:$0 sm:$0xff] }
 0x250   :  { %v180_v19 = vmul.f32 %v502_v60, %v178_v17  ;;  %v179_v21 = vadd.f32 0.2548296, %v177_v18 }
 0x252   :  { %v190_v22 = vmul.f32 %v506_v20, %v180_v19  ;;  %v181_v23 = vmul.f32 %v504_v63, %v179_v21  ;;  %v440_v19 = vld [vmem:[%s692_s5 + $0x4] ss:$0 sm:$0xff] }
 0x254   :  { %v192_v25 = vsub.f32 1.0, %v190_v22  ;;  %v191_v26 = vmul.f32 %v508_v24, %v181_v23 }
 0x256   :  { %v196_v27 = vsub.f32 0.0, %v192_v25  ;;  %v193_v28 = vsub.f32 1.0, %v191_v26 }
 0x258   :  { %v198_v29 = vsel %vm194_vm2, %v192_v25, %v196_v27  ;;  %v197_v30 = vsub.f32 0.0, %v193_v28 }
 0x259   :  { %v200_v31 = vadd.f32 1.0, %v198_v29 }
 0x25a   :  { %v199_v32 = vsel %vm195_vm3, %v193_v28, %v197_v30 }
 0x25b   :  { %v201_v35 = vadd.f32 1.0, %v199_v32  ;;  %v202_v36 = vmul.f32 %v200_v31, %v150_v33 }
 0x25d   :  { %v203_v37 = vmul.f32 %v201_v35, %v151_v34 }
 0x25f   :  { %v206_v38 = vpack.c.bf16 %v203_v37, %v202_v36 }
 0x261   :  { %478 = vmatmul.mubr.bf16.vlgmr.msra.gmra.mrb[0].mxu1 %v206_v38 }
 0x334   :  { %v305_v41 = vpop.f32.mrb[0].mxu1 }
 0x335   :  { %v312_v43 = vadd.f32 %v305_v41, %v204_v40  ;;  %v479_v44 = vpop.f32.mrb[1].mxu1 }
 0x336   :  { %v308_v47 = vpop.f32.mrb[2].mxu1 }
 0x337   :  { %314 = vst.msk [vmem:[#allocation3] sm:$0xff] %vm37_vm0, %v312_v43  ;;  %v313_v48 = vadd.f32 %v308_v47, %v205_v42  ;;  %v480_v45 = vpop.f32.mrb[3].mxu1 }
 0x339   :  { %315 = vst.msk [vmem:[#allocation3 + $0x8] sm:$0xff] %vm37_vm0, %v313_v48 }
 0x33e   :  { %v324_v53 = vld [vmem:[#allocation3] sm:$0xff] }
 0x33f   :  { %v330_v54 = vadd.f32 %v437_v52, %v324_v53 }
 0x340   :  { %v325_v55 = vld [vmem:[#allocation3 + $0x8] sm:$0xff] }
 0x341   :  { %v362_v56 = vsel %vm343_vm6, %v330_v54, 0.0  ;;  %v331_v57 = vadd.f32 %v437_v52, %v325_v55 }
 0x342   :  { %v364_v58 = vadd.f32 %v362_v56, %v598_v0 }
 0x343   :  { %v363_v59 = vsel %vm357_vm7, %v331_v57, 0.0 }
 0x344   :  { %v366_v60 = vsel %vm37_vm0, %v364_v58, 0.0  ;;  %v365_v61 = vadd.f32 %v363_v59, %v603_v1 }
 0x345   :  { %367 = vadd.xlane.f32.xlu0 %v366_v60 }
 0x346   :  { %v369_v62 = vsel %vm37_vm0, %v365_v61, 0.0 }
 0x347   :  { %370 = vadd.xlane.f32.xlu1 %v369_v62 }
 0x3d2   :  { %v368_v63 = vpop.xlane.xlu0 %367 }
 0x3d3   :  { %v373_v2 = vmul.f32 0.03125, %v368_v63 }
 0x3d4   :  { %v371_v3 = vpop.xlane.xlu1 %370 }
 0x3d5   :  { %v375_v4 = vsub.f32 %v364_v58, %v373_v2  ;;  %v374_v5 = vmul.f32 0.03125, %v371_v3 }
 0x3d7   :  { %v376_v6 = vsub.f32 %v365_v61, %v374_v5  ;;  %v377_v7 = vmul.f32 %v375_v4, %v375_v4 }
 0x3d9   :  { %v379_v8 = vsel %vm37_vm0, %v377_v7, 0.0  ;;  %v378_v9 = vmul.f32 %v376_v6, %v376_v6 }
 0x3da   :  { %380 = vadd.xlane.f32.xlu0 %v379_v8 }
 0x3db   :  { %v382_v0 = vsel %vm37_vm0, %v378_v9, 0.0 }
 0x3dc   :  { %383 = vadd.xlane.f32.xlu1 %v382_v0 }
 0x467   :  { %v381_v10 = vpop.xlane.xlu0 %380 }
 0x468   :  { %v385_v1 = vmul.f32 0.03125, %v381_v10 }
 0x469   :  { %v384_v11 = vpop.xlane.xlu1 %383 }
 0x46a   :  { %v387_v12 = vadd.f32 1e-05, %v385_v1  ;;  %v386_v13 = vmul.f32 0.03125, %v384_v11 }
 0x46c   :  { %509 = vrsqrt.f32 %v387_v12  ;;  %v388_v14 = vadd.f32 1e-05, %v386_v13 }
 0x46e   :  { %511 = vrsqrt.f32 %v388_v14 }
 0x476   :  { %v510_v15 = vpop.eup %509 }
 0x477   :  { %v391_v17 = vmul.f32 %v510_v15, %v375_v4 }
 0x478   :  { %v512_v18 = vpop.eup %511 }
 0x479   :  { %v392_v20 = vmul.f32 %v512_v18, %v376_v6  ;;  %v397_v21 = vmul.f32 %v439_v16, %v391_v17 }
 0x47b   :  { %v398_v22 = vmul.f32 %v439_v16, %v392_v20  ;;  %v403_v23 = vadd.f32 %v440_v19, %v397_v21 }
 0x47d   :  { %v404_v24 = vadd.f32 %v440_v19, %v398_v22  ;;  %405 = vst.msk [vmem:[#allocation6] sm:$0xff] %vm37_vm0, %v403_v23 }
 0x47f   :  { %406 = vst.msk [vmem:[#allocation6 + $0x8] sm:$0xff] %vm37_vm0, %v404_v24 }
 0x480   :  { %536 = shalt.err (!%p533_p9)
}
 0x481   :  { %s537_s13 = scalar_lea.hbm %s693_s6, 256 }
 0x482   :  { %p538_p10 = scmp.ne.s32.totalorder %s693_s6, %s537_s13  ;;  %p541_p11 = scmp.lt.u32.totalorder %s537_s13, %s693_s6 }
 0x484   :  { %p543_p12 = pnand %p541_p11, %p538_p10 }
 0x486   :  { %546 = shalt.err (!%p543_p12)
}
 0x487   :  { %s555_s18 = smov 128   ;;  %s556_s19 = smov 8  }
 0x488   :  { %418 = dma.vmem_to_hbm [thread:$0]  %s413_s10, 256, %s693_s6, [#allocation7], %s555_s18, %s555_s18, %s556_s19  }
 0x489   :  { %549 = dma.done.wait [#allocation7], 256  }
 0x48a   :  { %550 = vsyncadd [#allocation7], 4294967040 }
 0x48b   :  { %422 = vsyncpa [#allocation7], 1 }

</bundles_post_ra>
